<compile_context>
chip_gen: v5e
topology: v5e:2x2
jax: 0.10.0
libtpu: 0.0.40
codegen_flags: <defaults>
</compile_context>

<pallas_src>
import math
import functools

import jax
import jax.numpy as jnp
from jax import lax
from jax.experimental import pallas as pl
from jax.experimental.pallas import tpu as pltpu

_MIB = 1 << 20


def _pick_tile(dim: int, cap: int, aligns=(8,)) -> int:
    """Largest tile <= cap that divides `dim`, preferring the strictest
    alignment in `aligns` (MXU-edge / lane friendly).  Falls back to the full,
    unblocked dim when no aligned divisor exists (keeps the BlockSpec legal)."""
    if dim <= cap:
        return dim
    for align in aligns:
        t = (cap // align) * align
        while t >= align:
            if dim % t == 0:
                return t
            t -= align
    # TODO(synk): padding/masking path for awkward (prime-ish) dims > cap is not
    # implemented; such dims come back unblocked.
    return dim


def _compiler_params(semantics, vmem_bytes_needed):
    # Raise the scoped-VMEM limit explicitly (v5e default is only 16 MiB) while
    # staying inside v7x's 64 MiB physical VMEM.
    limit = int(min(max(vmem_bytes_needed * 5 // 4 + 8 * _MIB, 32 * _MIB), 48 * _MIB))
    return pltpu.CompilerParams(dimension_semantics=semantics,
                                vmem_limit_bytes=limit)


# ------------------------ tiled linear (x @ W + b) --------------------------

def _linear_kernel(x_ref, w_ref, b_ref, o_ref, acc_ref):
    k = pl.program_id(2)

    @pl.when(k == 0)
    def _():
        acc_ref[...] = jnp.zeros_like(acc_ref)

    acc_ref[...] += jnp.dot(x_ref[...], w_ref[...],
                            preferred_element_type=jnp.float32)

    @pl.when(k == pl.num_programs(2) - 1)
    def _():
        o_ref[...] = (acc_ref[...] + b_ref[...].astype(jnp.float32)).astype(o_ref.dtype)


def pallas_linear(x2d, w, b, *, tm_cap=512, tn_cap=512, tk_cap=1024):
    """x2d: (M, K) @ w: (K, N) + b: (N,) -> (M, N), tiled & pipelined."""
    M, K = x2d.shape
    N = w.shape[1]
    # MXU-edge aligned tiles: prefer 256 (v6e/v7x native edge), then 128 (v5e),
    # then 8 for the sublane dim.  Lane dims must be multiples of 128 or full.
    tm = _pick_tile(M, tm_cap, (256, 128, 8))
    tn = _pick_tile(N, tn_cap, (256, 128))
    tk = _pick_tile(K, tk_cap, (256, 128))
    grid = (M // tm, N // tn, K // tk)
    itemsize = jnp.dtype(x2d.dtype).itemsize
    vmem_need = 2 * (tm * tk + tk * tn + tn + tm * tn) * itemsize + tm * tn * 4
    cost = pl.CostEstimate(
        flops=2 * M * N * K,
        transcendentals=0,
        # include the tile re-fetch factors so XLA sees realistic HBM traffic
        bytes_accessed=(M * K * (N // tn) + K * N * (M // tm) + N + M * N) * itemsize,
    )
    return pl.pallas_call(
        _linear_kernel,
        out_shape=jax.ShapeDtypeStruct((M, N), x2d.dtype),
        grid=grid,
        in_specs=[
            pl.BlockSpec((tm, tk), lambda i, j, k: (i, k)),
            pl.BlockSpec((tk, tn), lambda i, j, k: (k, j)),
            pl.BlockSpec((1, tn), lambda i, j, k: (0, j)),
        ],
        out_specs=pl.BlockSpec((tm, tn), lambda i, j, k: (i, j)),
        scratch_shapes=[pltpu.VMEM((tm, tn), jnp.float32)],
        compiler_params=_compiler_params(("parallel", "parallel", "arbitrary"),
                                         vmem_need),
        cost_estimate=cost,
    )(x2d, w, b.reshape(1, N))


# --------------------- flash multi-head attention kernel --------------------

def _flash_mha_kernel(q_ref, k_ref, v_ref, o_ref, m_sc, l_sc, acc_sc, *,
                      scale, exp_dtype):
    # q_ref: (tq, H, D), k_ref/v_ref: (tk, H, D), o_ref: (tq, H*D)
    ki = pl.program_id(2)
    H = q_ref.shape[1]
    D = q_ref.shape[2]

    @pl.when(ki == 0)
    def _():
        m_sc[...] = jnp.full_like(m_sc, -jnp.inf)
        l_sc[...] = jnp.zeros_like(l_sc)
        acc_sc[...] = jnp.zeros_like(acc_sc)

    for h in range(H):                       # static unroll over heads
        # Slice the refs per head (no full (tq,H,D) materialization + re-slice).
        # Fold 1/sqrt(D) into q: tq*D VPU muls instead of tq*tk on the scores.
        qh = q_ref[:, h, :] * scale          # (tq, D)
        kh = k_ref[:, h, :]                  # (tk, D)
        vh = v_ref[:, h, :]                  # (tk, D)
        # q @ k^T without an explicit transpose: contract last dims on the MXU.
        s = lax.dot_general(qh, kh, (((1,), (1,)), ((), ())),
                            preferred_element_type=jnp.float32)      # (tq, tk)
        m_prev = m_sc[h]                                              # (tq, 1)
        m_new = jnp.maximum(m_prev, jnp.max(s, axis=-1, keepdims=True))
        alpha = jnp.exp(m_prev - m_new)
        # exp in exp_dtype (bf16 on the v6e/v7x bf16 path doubles EUP throughput);
        # running stats stay f32.
        p = jnp.exp((s - m_new).astype(exp_dtype))                    # (tq, tk)
        l_sc[h] = alpha * l_sc[h] + jnp.sum(p, axis=-1, keepdims=True,
                                            dtype=jnp.float32)
        acc_sc[h] = alpha * acc_sc[h] + jnp.dot(p.astype(vh.dtype), vh,
                                                preferred_element_type=jnp.float32)
        m_sc[h] = m_new

    @pl.when(ki == pl.num_programs(2) - 1)
    def _():
        out = acc_sc[...] / l_sc[...]        # exact normalization (no approx recip)
        # Single lane-dense (tq, E) store instead of H masked width-D stores.
        o_ref[...] = jnp.concatenate([out[h] for h in range(H)],
                                     axis=-1).astype(o_ref.dtype)


def pallas_flash_mha(qkv, batch, seqlen, num_heads, head_dim, *,
                     tq_cap=512, tk_cap=512, exp_dtype=None):
    """qkv: (B*S, 3*E) packed as (three, h, d) along the channel dim.
    Returns attention output already in 'b s (h d)' layout, shape (B, S, E)."""
    B, S, H, D = batch, seqlen, num_heads, head_dim
    E = H * D
    qkv5 = qkv.reshape(B, S, 3, H, D)        # free reshape, no HBM transpose
    itemsize = jnp.dtype(qkv.dtype).itemsize
    exp_dtype = jnp.dtype(exp_dtype) if exp_dtype is not None else jnp.dtype(jnp.float32)

    tq = _pick_tile(S, tq_cap, (8,))
    tk = _pick_tile(S, tk_cap, (8,))

    # Keep the double-buffered working set under ~24 MiB so it fits v7x's
    # 64 MiB physical VMEM (and the raised scoped limit) with headroom.
    def _need(tq_, tk_):
        io = 2 * (tq_ * E + 2 * tk_ * E + tq_ * E) * itemsize   # q,k,v,out x2 bufs
        scratch = (2 * H * tq_ + H * tq_ * D) * 4               # m, l, acc (f32)
        return io + scratch

    budget = 24 * _MIB
    while _need(tq, tk) > budget:
        if tk >= tq and tk > 128:
            nt = _pick_tile(S, tk // 2, (8,))
            if nt >= tk:
                break
            tk = nt
        elif tq > 128:
            nt = _pick_tile(S, tq // 2, (8,))
            if nt >= tq:
                break
            tq = nt
        else:
            break

    grid = (B, S // tq, S // tk)             # KV (reduction) axis last
    scale = 1.0 / math.sqrt(D)

    q_spec = pl.BlockSpec((None, tq, None, H, D), lambda b, qi, ki: (b, qi, 0, 0, 0))
    k_spec = pl.BlockSpec((None, tk, None, H, D), lambda b, qi, ki: (b, ki, 1, 0, 0))
    v_spec = pl.BlockSpec((None, tk, None, H, D), lambda b, qi, ki: (b, ki, 2, 0, 0))
    o_spec = pl.BlockSpec((None, tq, E), lambda b, qi, ki: (b, qi, 0))   # lane-dense

    cost = pl.CostEstimate(
        flops=4 * B * H * S * S * D,
        transcendentals=B * H * S * S,
        # Q read once, K/V re-fetched S//tq times, output written once.
        bytes_accessed=B * S * E * (2 + 2 * (S // tq)) * itemsize,
    )

    return pl.pallas_call(
        functools.partial(_flash_mha_kernel, scale=scale, exp_dtype=exp_dtype),
        out_shape=jax.ShapeDtypeStruct((B, S, E), qkv.dtype),
        grid=grid,
        in_specs=[q_spec, k_spec, v_spec],
        out_specs=o_spec,
        scratch_shapes=[
            pltpu.VMEM((H, tq, 1), jnp.float32),   # running row max
            pltpu.VMEM((H, tq, 1), jnp.float32),   # running denominator
            pltpu.VMEM((H, tq, D), jnp.float32),   # output accumulator
        ],
        # qi is "arbitrary" so a v7x 2-TC split lands on the batch axis
        # (disjoint K/V streams per core) instead of duplicating K/V traffic.
        compiler_params=_compiler_params(("parallel", "arbitrary", "arbitrary"),
                                         _need(tq, tk)),
        cost_estimate=cost,
    )(qkv5, qkv5, qkv5)


# ------------------------------ module wrapper -------------------------------

class NativeFlashMHAPallas:
    """JAX/Pallas re-implementation of rl4co NativeFlashMHA (inference forward).

    Pass dtype=jnp.bfloat16 for the bf16 MXU path (f32 accumulation is kept);
    bf16_exp=True additionally computes the softmax exp in bf16 (v6e/v7x EUP)."""

    def __init__(self, embed_dim, num_heads, key, dtype=jnp.float32, bf16_exp=False):
        assert embed_dim % num_heads == 0
        self.embed_dim = embed_dim
        self.num_heads = num_heads
        self.head_dim = embed_dim // num_heads
        assert self.head_dim % 8 == 0 and self.head_dim <= 128

        is_bf16 = jnp.dtype(dtype) == jnp.dtype(jnp.bfloat16)
        self.exp_dtype = jnp.bfloat16 if (bf16_exp and is_bf16) else jnp.float32

        k1, k2, k3, k4 = jax.random.split(key, 4)
        bound = 1.0 / math.sqrt(embed_dim)
        # Weights stored transposed (in, out) so kernels compute x @ W (no w.T).
        self.Wqkv = jax.random.uniform(k1, (embed_dim, 3 * embed_dim), dtype,
                                       minval=-bound, maxval=bound)
        self.bqkv = jax.random.uniform(k2, (3 * embed_dim,), dtype,
                                       minval=-bound, maxval=bound)
        self.Wout = jax.random.uniform(k3, (embed_dim, embed_dim), dtype,
                                       minval=-bound, maxval=bound)
        self.bout = jax.random.uniform(k4, (embed_dim,), dtype,
                                       minval=-bound, maxval=bound)

    def __call__(self, x):
        # x: (B, S, E)
        B, S, E = x.shape

        # Fused QKV projection + bias (tiled Pallas matmul).
        qkv = pallas_linear(x.reshape(B * S, E), self.Wqkv, self.bqkv)  # (B*S, 3E)

        # Flash attention. The head split 'b s (three h d) -> three b h s d' and
        # the merge 'b h s d -> b s (h d)' live entirely in BlockSpec index_maps.
        # TODO(synk): key_padding_mask / attention_dropout / causal not implemented
        # (module defaults: mask=None, dropout=0.0, causal=False).
        out = pallas_flash_mha(qkv, B, S, self.num_heads, self.head_dim,
                               exp_dtype=self.exp_dtype)                # (B, S, E)

        # Output projection (tiled Pallas matmul).
        y = pallas_linear(out.reshape(B * S, E), self.Wout, self.bout)
        return y.reshape(B, S, E)


# ---------------------------- pure-JAX reference -----------------------------

def reference_forward(mha, x):
    B, S, E = x.shape
    H, D = mha.num_heads, mha.head_dim
    qkv = x.reshape(B * S, E) @ mha.Wqkv + mha.bqkv
    qkv = qkv.reshape(B, S, 3, H, D).transpose(2, 0, 3, 1, 4)
    q, k, v = qkv[0], qkv[1], qkv[2]
    s = jnp.einsum("bhqd,bhkd->bhqk", q, k) / math.sqrt(D)
    p = jax.nn.softmax(s, axis=-1)
    out = jnp.einsum("bhqk,bhkd->bhqd", p, v)
    out = out.transpose(0, 2, 1, 3).reshape(B * S, E)
    return (out @ mha.Wout + mha.bout).reshape(B, S, E)


if __name__ == "__main__":
    key = jax.random.PRNGKey(0)
    k_param, k_x = jax.random.split(key)

    B, S, E, H = 2, 8, 32, 4          # head_dim = 8 (divisible by 8, <= 128)
    x = jax.random.normal(k_x, (B, S, E), jnp.float32)

    # f32 path (exact softmax normalization).
    mha = NativeFlashMHAPallas(E, H, k_param, dtype=jnp.float32)
    y = jax.block_until_ready(mha(x))
    y_ref = reference_forward(mha, x)
    assert y.shape == (B, S, E)
    assert jnp.allclose(y, y_ref, atol=2e-3, rtol=2e-3), "f32 mismatch vs reference"

    # bf16 MXU path (perf-recommended on v5e/v6e/v7x): bf16 I/O, f32 accumulation,
    # bf16 softmax exp.
    mha16 = NativeFlashMHAPallas(E, H, k_param, dtype=jnp.bfloat16, bf16_exp=True)
    x16 = x.astype(jnp.bfloat16)
    y16 = jax.block_until_ready(mha16(x16))
    y16_ref = reference_forward(mha16, x16)
    assert y16.shape == (B, S, E)
    assert jnp.allclose(y16.astype(jnp.float32), y16_ref.astype(jnp.float32),
                        atol=2e-1, rtol=1e-1), "bf16 mismatch vs reference"

    print("KERNEL_OK")
</pallas_src>

<mosaic_0001>
module attributes {stable_mosaic.version = 11 : i64} {
  func.func @_linear_kernel(%arg0: i32, %arg1: i32, %arg2: i32, %arg3: memref<16x32xf32, #tpu.memory_space<vmem>>, %arg4: memref<32x96xf32, #tpu.memory_space<vmem>>, %arg5: memref<1x96xf32, #tpu.memory_space<vmem>>, %arg6: memref<16x96xf32, #tpu.memory_space<vmem>>, %arg7: memref<16x96xf32, #tpu.memory_space<vmem>>) attributes {dimension_semantics = [#tpu.dimension_semantics<parallel>, #tpu.dimension_semantics<parallel>, #tpu.dimension_semantics<arbitrary>], iteration_bounds = array<i64: 1, 1, 1>, scalar_prefetch = 0 : i64, scratch_operands = 1 : i64, tpu.core_type = #tpu.core_type<tc>, window_params = [{transform_indices = @transform_0, window_bounds = array<i64: 16, 32>}, {transform_indices = @transform_1, window_bounds = array<i64: 32, 96>}, {transform_indices = @transform_2, window_bounds = array<i64: 1, 96>}, {transform_indices = @transform_3, window_bounds = array<i64: 16, 96>}]} {
    %c0_i32 = arith.constant 0 : i32
    %0 = arith.cmpi eq, %arg2, %c0_i32 : i32
    %1 = arith.extui %0 : i1 to i32
    %c0_i32_0 = arith.constant 0 : i32
    %2 = arith.cmpi ne, %1, %c0_i32_0 : i32
    scf.if %2 {
      %cst_10 = arith.constant 0.000000e+00 : f32
      %12 = vector.broadcast %cst_10 : f32 to vector<16x96xf32>
      %c0_11 = arith.constant 0 : index
      %c0_12 = arith.constant 0 : index
      %13 = vector.load %arg7[%c0_11, %c0_12] : memref<16x96xf32, #tpu.memory_space<vmem>>, vector<16x96xf32>
      tpu.vector_store %arg7[%c0_11, %c0_12], %12 {strides = array<i32>} : memref<16x96xf32, #tpu.memory_space<vmem>>, vector<16x96xf32>,
    } else {
    }
    %c0 = arith.constant 0 : index
    %c0_1 = arith.constant 0 : index
    %3 = vector.load %arg7[%c0, %c0_1] : memref<16x96xf32, #tpu.memory_space<vmem>>, vector<16x96xf32>
    %c0_2 = arith.constant 0 : index
    %c0_3 = arith.constant 0 : index
    %4 = vector.load %arg3[%c0_2, %c0_3] : memref<16x32xf32, #tpu.memory_space<vmem>>, vector<16x32xf32>
    %c0_4 = arith.constant 0 : index
    %c0_5 = arith.constant 0 : index
    %5 = vector.load %arg4[%c0_4, %c0_5] : memref<32x96xf32, #tpu.memory_space<vmem>>, vector<32x96xf32>
    %cst = arith.constant dense<0.000000e+00> : vector<16x96xf32>
    %6 = tpu.matmul %4, %5, %cst {dimension_numbers = #tpu.dot_dimension_numbers<[1], [0], [0], [1], [0, 0, 1, 1], [], []>} : vector<16x32xf32>, vector<32x96xf32>, vector<16x96xf32> -> vector<16x96xf32>
    %7 = arith.addf %3, %6 : vector<16x96xf32>
    %c0_6 = arith.constant 0 : index
    %c0_7 = arith.constant 0 : index
    %8 = vector.load %arg7[%c0_6, %c0_7] : memref<16x96xf32, #tpu.memory_space<vmem>>, vector<16x96xf32>
    tpu.vector_store %arg7[%c0_6, %c0_7], %7 {strides = array<i32>} : memref<16x96xf32, #tpu.memory_space<vmem>>, vector<16x96xf32>,
    %c0_i32_8 = arith.constant 0 : i32
    %9 = arith.cmpi eq, %arg2, %c0_i32_8 : i32
    %10 = arith.extui %9 : i1 to i32
    %c0_i32_9 = arith.constant 0 : i32
    %11 = arith.cmpi ne, %10, %c0_i32_9 : i32
    scf.if %11 {
      %c0_10 = arith.constant 0 : index
      %c0_11 = arith.constant 0 : index
      %12 = vector.load %arg7[%c0_10, %c0_11] : memref<16x96xf32, #tpu.memory_space<vmem>>, vector<16x96xf32>
      %c0_12 = arith.constant 0 : index
      %c0_13 = arith.constant 0 : index
      %13 = vector.load %arg5[%c0_12, %c0_13] : memref<1x96xf32, #tpu.memory_space<vmem>>, vector<1x96xf32>
      %14 = vector.broadcast %13 : vector<1x96xf32> to vector<16x96xf32>
      %15 = arith.addf %12, %14 : vector<16x96xf32>
      %c0_14 = arith.constant 0 : index
      %c0_15 = arith.constant 0 : index
      %16 = vector.load %arg6[%c0_14, %c0_15] : memref<16x96xf32, #tpu.memory_space<vmem>>, vector<16x96xf32>
      tpu.vector_store %arg6[%c0_14, %c0_15], %15 {strides = array<i32>} : memref<16x96xf32, #tpu.memory_space<vmem>>, vector<16x96xf32>,
    } else {
    }
    return
  }
  func.func @transform_0(%arg0: i32, %arg1: i32, %arg2: i32) -> (i32, i32) {
    %c0_i32 = arith.constant 0 : i32
    return %arg0, %arg2 : i32, i32
  }
  func.func @transform_1(%arg0: i32, %arg1: i32, %arg2: i32) -> (i32, i32) {
    %c0_i32 = arith.constant 0 : i32
    return %arg2, %arg1 : i32, i32
  }
  func.func @transform_2(%arg0: i32, %arg1: i32, %arg2: i32) -> (i32, i32) {
    %c0_i32 = arith.constant 0 : i32
    %c0_i32_0 = arith.constant 0 : i32
    return %c0_i32, %arg1 : i32, i32
  }
  func.func @transform_3(%arg0: i32, %arg1: i32, %arg2: i32) -> (i32, i32) {
    %c0_i32 = arith.constant 0 : i32
    return %arg0, %arg1 : i32, i32
  }
}

</mosaic_0001>

<bundles_post_ra>
// kernel: tpu_custom_call.1
= control target key start
LH: loop header
LB: loop body
LE: loop exit
PB: predicated region body
PF: predicated region fallthrough
CT: control target
= control target key end

     0   :  { %8 = vsyncpa [#allocation4], 0  ;;  %s274_s0 = inlined_call_operand.hbm [shape: f32[16,32], index: 0, kind: input, shape index: {}]   ;;  %s275_s1 = inlined_call_operand.hbm [shape: f32[32,96], index: 1, kind: input, shape index: {}]   ;;  %s276_s2 = inlined_call_operand.vmem [shape: f32[1,96], index: 2, kind: input, shape index: {}]   ;;  %s277_s3 = inlined_call_operand.hbm [shape: f32[16,96], index: 3, kind: output, shape index: {}]  }
   0x1   :  { %9 = vsyncpa [#allocation7], 0 }
   0x2   :  { %10 = vsyncpa [#allocation5], 0  ;;  %s15_s14 = sshll.u32 %s274_s0, 4  ;;  %s221_s15 = smov [#allocation3]   ;;  %s16_s14 = int_to_ptr.hbm [resolvable:$true] %s15_s14 }
   0x3   :  { %s17_s16 = sshll.u32 %s221_s15, 4  ;;  %s28_s19 = sshll.u32 %s275_s1, 4  ;;  %s18_s16 = int_to_ptr.vmem [resolvable:$true] %s17_s16  ;;  %s29_s19 = int_to_ptr.hbm [resolvable:$true] %s28_s19 }
   0x4   :  { %s222_s20 = smov 128   ;;  %s223_s21 = smov 8  }
   0x5   :  { %23 = dma.hbm_to_vmem [thread:$0]  %s16_s14, 256, %s18_s16, [#allocation4], %s222_s20, %s222_s20, %s223_s21  }
   0x6   :  { %s224_s22 = smov [#allocation6]  }
   0x7   :  { %s30_s23 = sshll.u32 %s224_s22, 4  ;;  %s31_s23 = int_to_ptr.vmem [resolvable:$true] %s30_s23 }
   0x8   :  { %36 = dma.hbm_to_vmem [thread:$0]  %s29_s19, 512, %s31_s23, [#allocation7], %s222_s20, %s222_s20, %s223_s21  }
   0x9   :  { %215 = dma.done.wait [#allocation4], 256  }
   0xa   :  { %216 = vsyncadd [#allocation4], 4294967040 }
   0xb   :  { %217 = dma.done.wait [#allocation7], 512  }
   0xc   :  { %218 = vsyncadd [#allocation7], 4294966784  ;;  %vm51_vm0 = vcmask 785408   ;;  %v225_v0 = vmov 0.0   ;;  %v61_v1 = vld [vmem:[#allocation6 + $0x18] sm:$0xff]  ;;  %v60_v2 = vld [vmem:[#allocation6 + $0x10] sm:$0xff] }
   0xd   :  { %52 = vst.msk [vmem:[#allocation2] sm:$0xff] %vm51_vm0, %v225_v0  ;;  %81 = vmatpush.msra.mxu0 %v61_v1  ;;  %132 = vmatpush.msra.mxu1 %v61_v1  ;;  %v59_v3 = vld [vmem:[#allocation6 + $0x8] sm:$0xff]  ;;  %v58_v4 = vld [vmem:[#allocation6] sm:$0xff]  ;;  %v56_v5 = vld [vmem:[#allocation3] sm:$0xff]  ;;  %vm62_vm1 = vcmask 261120   ;;  %s226_s24 = smov [#allocation8]  }
   0xe   :  { %53 = vst.msk [vmem:[#allocation2 + $0x8] sm:$0xff] %vm51_vm0, %v225_v0  ;;  %v57_v6 = vld [vmem:[#allocation3 + $0x8] sm:$0xff]  ;;  %v142_v13 = vld [vmem:[%s276_s2] ss:$0 sm:$0xff]  ;;  %s114_s25 = sshll.u32 %s226_s24, 4  ;;  %s116_s28 = sshll.u32 %s277_s3, 4  ;;  %s115_s25 = int_to_ptr.vmem [resolvable:$true] %s114_s25  ;;  %s117_s28 = int_to_ptr.hbm [resolvable:$true] %s116_s28 }
   0xf   :  { %82 = vmatpush.msra.mxu0 %v60_v2  ;;  %133 = vmatpush.msra.mxu1 %v60_v2 }
  0x11   :  { %83 = vmatpush.msra.mxu0 %v59_v3  ;;  %134 = vmatpush.msra.mxu1 %v59_v3 }
  0x13   :  { %84 = vmatpush.msra.mxu0 %v58_v4  ;;  %135 = vmatpush.msra.mxu1 %v58_v4 }
  0x14   :  { %130 = vmatmul.msk.f32.vlgmr.msra.gmra.mxu0 %vm62_vm1, %v56_v5  ;;  %131 = vmatmul.msk.f32.vlgmr.msra.gmra.mxu1 %vm62_vm1, %v57_v6  ;;  %v54_v7 = vld [vmem:[#allocation2] sm:$0xff] }
  0x15   :  { %v55_v8 = vld [vmem:[#allocation2 + $0x8] sm:$0xff] }
  0x91   :  { %v86_v9 = vpop.f32.mrf.mxu0  ;;  %v89_v10 = vpop.f32.mrf.mxu1 }
  0x92   :  { %v92_v11 = vadd.f32 %v86_v9, %v54_v7  ;;  %v93_v12 = vadd.f32 %v89_v10, %v55_v8 }
  0x94   :  { %95 = vst.msk [vmem:[#allocation2] sm:$0xff] %vm51_vm0, %v92_v11 }
  0x95   :  { %96 = vst.msk [vmem:[#allocation2 + $0x8] sm:$0xff] %vm51_vm0, %v93_v12 }
  0x9b   :  { %v100_v14 = vld [vmem:[#allocation2] sm:$0xff] }
  0x9c   :  { %v101_v15 = vld [vmem:[#allocation2 + $0x8] sm:$0xff]  ;;  %v106_v16 = vadd.f32 %v142_v13, %v100_v14 }
  0x9d   :  { %v107_v17 = vadd.f32 %v142_v13, %v101_v15 }
  0x9e   :  { %108 = vst.msk [vmem:[#allocation8] sm:$0xff] %vm51_vm0, %v106_v16 }
  0x9f   :  { %109 = vst.msk [vmem:[#allocation8 + $0x8] sm:$0xff] %vm51_vm0, %v107_v17 }
  0xa0   :  { %122 = dma.vmem_to_hbm [thread:$0]  %s115_s25, 256, %s117_s28, [#allocation5], %s222_s20, %s222_s20, %s223_s21  }
  0xa1   :  { %219 = dma.done.wait [#allocation5], 256  }
  0xa2   :  { %220 = vsyncadd [#allocation5], 4294967040 }
  0xa3   :  { %127 = vsyncpa [#allocation4], 1 }
  0xa4   :  { %128 = vsyncpa [#allocation7], 1 }
  0xa5   :  { %129 = vsyncpa [#allocation5], 1 }

</bundles_post_ra>
